<compile_context>
chip_gen: v5e
topology: v5e:2x2
jax: 0.10.0
libtpu: 0.0.40
codegen_flags: <defaults>
</compile_context>

<pallas_src>
import jax
import jax.numpy as jnp
from jax.experimental import pallas as pl
from jax.experimental.pallas import tpu as pltpu

LANE = 128
SUBLANE = 8
N_CONTROL = 3
N_GEAR = 8
N_PAD = LANE  # fused control+gear head padded to one lane-dense 128-wide slab


def _round_up(n, m):
    return ((n + m - 1) // m) * m


def _cdiv(a, b):
    return (a + b - 1) // b


# ----------------------------- kernel ---------------------------------------


def driving_mlp_kernel(
    x_ref,                      # (TB, input_dim) f32
    w1_ref, b1_ref,             # (input_dim, H) bf16, (1, H) f32
    w2_ref, b2_ref,             # (H, H)        bf16, (1, H) f32
    w3_ref, b3_ref,             # (H, H)        bf16, (1, H) f32
    wh_ref, bh_ref,             # (H, N_PAD)    bf16, (1, N_PAD) f32 (fused heads)
    out_ref,                    # (TB, N_PAD)   bf16
):
    # Backbone: Linear -> ReLU, three times.  bf16 MXU inputs, f32 accumulate,
    # bias-add / ReLU in f32 on the VPU.  x is cast f32->bf16 in-kernel.
    h = jnp.dot(x_ref[...].astype(jnp.bfloat16), w1_ref[...],
                preferred_element_type=jnp.float32) + b1_ref[...]
    h = jnp.maximum(h, 0.0)

    h = jnp.dot(h.astype(jnp.bfloat16), w2_ref[...],
                preferred_element_type=jnp.float32) + b2_ref[...]
    h = jnp.maximum(h, 0.0)

    h = jnp.dot(h.astype(jnp.bfloat16), w3_ref[...],
                preferred_element_type=jnp.float32) + b3_ref[...]
    h = jnp.maximum(h, 0.0)

    # Fused heads: one lane-dense (TB, 128) matmul + unmasked bf16 store.
    head = jnp.dot(h.astype(jnp.bfloat16), wh_ref[...],
                   preferred_element_type=jnp.float32) + bh_ref[...]
    out_ref[...] = head.astype(out_ref.dtype)


# ----------------------------- params ----------------------------------------


def init_params(key, input_dim, hidden_dim=128):
    """PyTorch-style uniform(-1/sqrt(fan_in)) init; weights stored (in, out)."""

    def linear(k, fan_in, fan_out):
        kw, kb = jax.random.split(k)
        bound = 1.0 / (fan_in ** 0.5)
        w = jax.random.uniform(kw, (fan_in, fan_out), jnp.float32, -bound, bound)
        b = jax.random.uniform(kb, (fan_out,), jnp.float32, -bound, bound)
        return w, b

    k1, k2, k3, k4, k5 = jax.random.split(key, 5)
    w1, b1 = linear(k1, input_dim, hidden_dim)
    w2, b2 = linear(k2, hidden_dim, hidden_dim)
    w3, b3 = linear(k3, hidden_dim, hidden_dim)
    wc, bc = linear(k4, hidden_dim, N_CONTROL)
    wg, bg = linear(k5, hidden_dim, N_GEAR)
    return dict(w1=w1, b1=b1, w2=w2, b2=b2, w3=w3, b3=b3,
                wc=wc, bc=bc, wg=wg, bg=bg)


def prepare_params(p):
    """Called ONCE at init: fuse + pad heads to a 128-wide slab, cast to bf16."""
    hidden = p["w1"].shape[1]

    wh = jnp.zeros((hidden, N_PAD), jnp.float32)
    wh = wh.at[:, :N_CONTROL].set(p["wc"])
    wh = wh.at[:, N_CONTROL:N_CONTROL + N_GEAR].set(p["wg"])
    bh = jnp.zeros((N_PAD,), jnp.float32)
    bh = bh.at[:N_CONTROL].set(p["bc"])
    bh = bh.at[N_CONTROL:N_CONTROL + N_GEAR].set(p["bg"])

    to_bf16 = lambda w: w.astype(jnp.bfloat16)
    row = lambda b: b.reshape(1, -1).astype(jnp.float32)

    kp = dict(
        w1=to_bf16(p["w1"]), b1=row(p["b1"]),
        w2=to_bf16(p["w2"]), b2=row(p["b2"]),
        w3=to_bf16(p["w3"]), b3=row(p["b3"]),
        wh=to_bf16(wh), bh=row(bh),
    )
    return jax.tree_util.tree_map(jax.block_until_ready, kp)


# ----------------------------- forward ---------------------------------------


def _pick_tb(batch):
    """Largest batch tile (multiple of 8, <= 1024), with >= 2 grid steps when
    the batch is big enough so the parallel batch axis spans both v7x cores."""
    tb = min(_round_up(batch, SUBLANE), 1024)
    if batch > SUBLANE and _round_up(batch, tb) // tb < 2:
        tb = _round_up(_cdiv(batch, 2), SUBLANE)
    return tb


@jax.jit
def _driving_mlp_forward_impl(x, w1, b1, w2, b2, w3, b3, wh, bh):
    B, input_dim = x.shape
    H = w1.shape[1]

    TB = _pick_tb(B)
    B_pad = _round_up(B, TB)
    if B_pad != B:
        # Single fused pad (rows only); cols stay at input_dim (no K padding).
        x = jnp.pad(x, ((0, B_pad - B), (0, 0)))

    const = lambda i: (0, 0)          # weights / biases: VMEM-resident block
    batch = lambda i: (i, 0)          # x / out: tiled over the batch axis

    out = pl.pallas_call(
        driving_mlp_kernel,
        grid=(B_pad // TB,),
        in_specs=[
            pl.BlockSpec((TB, input_dim), batch),
            pl.BlockSpec((input_dim, H), const), pl.BlockSpec((1, H), const),
            pl.BlockSpec((H, H), const),         pl.BlockSpec((1, H), const),
            pl.BlockSpec((H, H), const),         pl.BlockSpec((1, H), const),
            pl.BlockSpec((H, N_PAD), const),     pl.BlockSpec((1, N_PAD), const),
        ],
        out_specs=pl.BlockSpec((TB, N_PAD), batch),
        out_shape=jax.ShapeDtypeStruct((B_pad, N_PAD), jnp.bfloat16),
        compiler_params=pltpu.CompilerParams(
            dimension_semantics=("parallel",)),
    )(x, w1, b1, w2, b2, w3, b3, wh, bh)

    # One slice + upcast of the 11 real columns, then the cheap 3/8 split;
    # all fused by XLA inside this jit.
    head = out[:B, :N_CONTROL + N_GEAR].astype(jnp.float32)
    control = head[:, :N_CONTROL]
    gear_logits = head[:, N_CONTROL:]
    return control, gear_logits


def driving_mlp_forward(x, kernel_params):
    """x: (B, input_dim) f32 -> (control (B,3) f32, gear_logits (B,8) f32)."""
    kp = kernel_params
    return _driving_mlp_forward_impl(
        x, kp["w1"], kp["b1"], kp["w2"], kp["b2"],
        kp["w3"], kp["b3"], kp["wh"], kp["bh"])


# ----------------------------- reference -------------------------------------


def reference_forward(x, p):
    """Plain-JAX reference with matching bf16-in / f32-accum / bf16-out numerics."""
    def mm(a, w):
        return jnp.dot(a.astype(jnp.bfloat16), w.astype(jnp.bfloat16),
                       preferred_element_type=jnp.float32)

    h = jnp.maximum(mm(x, p["w1"]) + p["b1"], 0.0)
    h = jnp.maximum(mm(h, p["w2"]) + p["b2"], 0.0)
    h = jnp.maximum(mm(h, p["w3"]) + p["b3"], 0.0)
    c = (mm(h, p["wc"]) + p["bc"]).astype(jnp.bfloat16).astype(jnp.float32)
    g = (mm(h, p["wg"]) + p["bg"]).astype(jnp.bfloat16).astype(jnp.float32)
    return c, g


if __name__ == "__main__":
    key = jax.random.PRNGKey(0)
    k_x, k_p = jax.random.split(key)

    batch, input_dim, hidden_dim = 8, 32, 128
    x = jax.random.normal(k_x, (batch, input_dim), jnp.float32)

    params = init_params(k_p, input_dim, hidden_dim)
    kernel_params = prepare_params(params)   # one-time weight prep (cached)

    control, gear_logits = driving_mlp_forward(x, kernel_params)
    jax.block_until_ready((control, gear_logits))

    ref_control, ref_gear = reference_forward(x, params)
    assert control.shape == (batch, N_CONTROL)
    assert gear_logits.shape == (batch, N_GEAR)
    # bf16 output store adds ~4e-3 relative rounding -> tolerance loosened.
    assert jnp.allclose(control, ref_control, atol=2e-2, rtol=2e-2)
    assert jnp.allclose(gear_logits, ref_gear, atol=2e-2, rtol=2e-2)

    print("KERNEL_OK")
</pallas_src>

<mosaic_0001>
module attributes {stable_mosaic.version = 11 : i64} {
  func.func @driving_mlp_kernel(%arg0: i32, %arg1: memref<8x32xf32, #tpu.memory_space<vmem>>, %arg2: memref<32x128xbf16, #tpu.memory_space<vmem>>, %arg3: memref<1x128xf32, #tpu.memory_space<vmem>>, %arg4: memref<128x128xbf16, #tpu.memory_space<vmem>>, %arg5: memref<1x128xf32, #tpu.memory_space<vmem>>, %arg6: memref<128x128xbf16, #tpu.memory_space<vmem>>, %arg7: memref<1x128xf32, #tpu.memory_space<vmem>>, %arg8: memref<128x128xbf16, #tpu.memory_space<vmem>>, %arg9: memref<1x128xf32, #tpu.memory_space<vmem>>, %arg10: memref<8x128xbf16, #tpu.memory_space<vmem>>) attributes {dimension_semantics = [#tpu.dimension_semantics<parallel>], iteration_bounds = array<i64: 1>, scalar_prefetch = 0 : i64, scratch_operands = 0 : i64, tpu.core_type = #tpu.core_type<tc>, window_params = [{transform_indices = @transform_0, window_bounds = array<i64: 8, 32>}, {pipeline_mode = #tpu.pipeline_mode<synchronous>, transform_indices = @transform_1, window_bounds = array<i64: 32, 128>}, {pipeline_mode = #tpu.pipeline_mode<synchronous>, transform_indices = @transform_2, window_bounds = array<i64: 1, 128>}, {pipeline_mode = #tpu.pipeline_mode<synchronous>, transform_indices = @transform_3, window_bounds = array<i64: 128, 128>}, {pipeline_mode = #tpu.pipeline_mode<synchronous>, transform_indices = @transform_4, window_bounds = array<i64: 1, 128>}, {pipeline_mode = #tpu.pipeline_mode<synchronous>, transform_indices = @transform_5, window_bounds = array<i64: 128, 128>}, {pipeline_mode = #tpu.pipeline_mode<synchronous>, transform_indices = @transform_6, window_bounds = array<i64: 1, 128>}, {pipeline_mode = #tpu.pipeline_mode<synchronous>, transform_indices = @transform_7, window_bounds = array<i64: 128, 128>}, {pipeline_mode = #tpu.pipeline_mode<synchronous>, transform_indices = @transform_8, window_bounds = array<i64: 1, 128>}, {transform_indices = @transform_9, window_bounds = array<i64: 8, 128>}]} {
    %c0 = arith.constant 0 : index
    %c0_0 = arith.constant 0 : index
    %0 = vector.load %arg1[%c0, %c0_0] : memref<8x32xf32, #tpu.memory_space<vmem>>, vector<8x32xf32>
    %1 = arith.truncf %0 : vector<8x32xf32> to vector<8x32xbf16>
    %c0_1 = arith.constant 0 : index
    %c0_2 = arith.constant 0 : index
    %2 = vector.load %arg2[%c0_1, %c0_2] : memref<32x128xbf16, #tpu.memory_space<vmem>>, vector<32x128xbf16>
    %cst = arith.constant dense<0.000000e+00> : vector<8x128xf32>
    %3 = tpu.matmul %1, %2, %cst {dimension_numbers = #tpu.dot_dimension_numbers<[1], [0], [0], [1], [0, 0, 1, 1], [], []>} : vector<8x32xbf16>, vector<32x128xbf16>, vector<8x128xf32> -> vector<8x128xf32>
    %c0_3 = arith.constant 0 : index
    %c0_4 = arith.constant 0 : index
    %4 = vector.load %arg3[%c0_3, %c0_4] : memref<1x128xf32, #tpu.memory_space<vmem>>, vector<1x128xf32>
    %5 = vector.broadcast %4 : vector<1x128xf32> to vector<8x128xf32>
    %6 = arith.addf %3, %5 : vector<8x128xf32>
    %cst_5 = arith.constant 0.000000e+00 : f32
    %7 = vector.broadcast %cst_5 : f32 to vector<8x128xf32>
    %8 = arith.maximumf %6, %7 : vector<8x128xf32>
    %9 = arith.truncf %8 : vector<8x128xf32> to vector<8x128xbf16>
    %c0_6 = arith.constant 0 : index
    %c0_7 = arith.constant 0 : index
    %10 = vector.load %arg4[%c0_6, %c0_7] : memref<128x128xbf16, #tpu.memory_space<vmem>>, vector<128x128xbf16>
    %cst_8 = arith.constant dense<0.000000e+00> : vector<8x128xf32>
    %11 = tpu.matmul %9, %10, %cst_8 {dimension_numbers = #tpu.dot_dimension_numbers<[1], [0], [0], [1], [0, 0, 1, 1], [], []>} : vector<8x128xbf16>, vector<128x128xbf16>, vector<8x128xf32> -> vector<8x128xf32>
    %c0_9 = arith.constant 0 : index
    %c0_10 = arith.constant 0 : index
    %12 = vector.load %arg5[%c0_9, %c0_10] : memref<1x128xf32, #tpu.memory_space<vmem>>, vector<1x128xf32>
    %13 = vector.broadcast %12 : vector<1x128xf32> to vector<8x128xf32>
    %14 = arith.addf %11, %13 : vector<8x128xf32>
    %cst_11 = arith.constant 0.000000e+00 : f32
    %15 = vector.broadcast %cst_11 : f32 to vector<8x128xf32>
    %16 = arith.maximumf %14, %15 : vector<8x128xf32>
    %17 = arith.truncf %16 : vector<8x128xf32> to vector<8x128xbf16>
    %c0_12 = arith.constant 0 : index
    %c0_13 = arith.constant 0 : index
    %18 = vector.load %arg6[%c0_12, %c0_13] : memref<128x128xbf16, #tpu.memory_space<vmem>>, vector<128x128xbf16>
    %cst_14 = arith.constant dense<0.000000e+00> : vector<8x128xf32>
    %19 = tpu.matmul %17, %18, %cst_14 {dimension_numbers = #tpu.dot_dimension_numbers<[1], [0], [0], [1], [0, 0, 1, 1], [], []>} : vector<8x128xbf16>, vector<128x128xbf16>, vector<8x128xf32> -> vector<8x128xf32>
    %c0_15 = arith.constant 0 : index
    %c0_16 = arith.constant 0 : index
    %20 = vector.load %arg7[%c0_15, %c0_16] : memref<1x128xf32, #tpu.memory_space<vmem>>, vector<1x128xf32>
    %21 = vector.broadcast %20 : vector<1x128xf32> to vector<8x128xf32>
    %22 = arith.addf %19, %21 : vector<8x128xf32>
    %cst_17 = arith.constant 0.000000e+00 : f32
    %23 = vector.broadcast %cst_17 : f32 to vector<8x128xf32>
    %24 = arith.maximumf %22, %23 : vector<8x128xf32>
    %25 = arith.truncf %24 : vector<8x128xf32> to vector<8x128xbf16>
    %c0_18 = arith.constant 0 : index
    %c0_19 = arith.constant 0 : index
    %26 = vector.load %arg8[%c0_18, %c0_19] : memref<128x128xbf16, #tpu.memory_space<vmem>>, vector<128x128xbf16>
    %cst_20 = arith.constant dense<0.000000e+00> : vector<8x128xf32>
    %27 = tpu.matmul %25, %26, %cst_20 {dimension_numbers = #tpu.dot_dimension_numbers<[1], [0], [0], [1], [0, 0, 1, 1], [], []>} : vector<8x128xbf16>, vector<128x128xbf16>, vector<8x128xf32> -> vector<8x128xf32>
    %c0_21 = arith.constant 0 : index
    %c0_22 = arith.constant 0 : index
    %28 = vector.load %arg9[%c0_21, %c0_22] : memref<1x128xf32, #tpu.memory_space<vmem>>, vector<1x128xf32>
    %29 = vector.broadcast %28 : vector<1x128xf32> to vector<8x128xf32>
    %30 = arith.addf %27, %29 : vector<8x128xf32>
    %31 = arith.truncf %30 : vector<8x128xf32> to vector<8x128xbf16>
    %c0_23 = arith.constant 0 : index
    %c0_24 = arith.constant 0 : index
    %32 = vector.load %arg10[%c0_23, %c0_24] : memref<8x128xbf16, #tpu.memory_space<vmem>>, vector<8x128xbf16>
    tpu.vector_store %arg10[%c0_23, %c0_24], %31 {strides = array<i32>} : memref<8x128xbf16, #tpu.memory_space<vmem>>, vector<8x128xbf16>,
    return
  }
  func.func @transform_0(%arg0: i32) -> (i32, i32) {
    %c0_i32 = arith.constant 0 : i32
    %c0_i32_0 = arith.constant 0 : i32
    return %arg0, %c0_i32 : i32, i32
  }
  func.func @transform_1(%arg0: i32) -> (i32, i32) {
    %c0_i32 = arith.constant 0 : i32
    %c0_i32_0 = arith.constant 0 : i32
    %c0_i32_1 = arith.constant 0 : i32
    return %c0_i32, %c0_i32_0 : i32, i32
  }
  func.func @transform_2(%arg0: i32) -> (i32, i32) {
    %c0_i32 = arith.constant 0 : i32
    %c0_i32_0 = arith.constant 0 : i32
    %c0_i32_1 = arith.constant 0 : i32
    return %c0_i32, %c0_i32_0 : i32, i32
  }
  func.func @transform_3(%arg0: i32) -> (i32, i32) {
    %c0_i32 = arith.constant 0 : i32
    %c0_i32_0 = arith.constant 0 : i32
    %c0_i32_1 = arith.constant 0 : i32
    return %c0_i32, %c0_i32_0 : i32, i32
  }
  func.func @transform_4(%arg0: i32) -> (i32, i32) {
    %c0_i32 = arith.constant 0 : i32
    %c0_i32_0 = arith.constant 0 : i32
    %c0_i32_1 = arith.constant 0 : i32
    return %c0_i32, %c0_i32_0 : i32, i32
  }
  func.func @transform_5(%arg0: i32) -> (i32, i32) {
    %c0_i32 = arith.constant 0 : i32
    %c0_i32_0 = arith.constant 0 : i32
    %c0_i32_1 = arith.constant 0 : i32
    return %c0_i32, %c0_i32_0 : i32, i32
  }
  func.func @transform_6(%arg0: i32) -> (i32, i32) {
    %c0_i32 = arith.constant 0 : i32
    %c0_i32_0 = arith.constant 0 : i32
    %c0_i32_1 = arith.constant 0 : i32
    return %c0_i32, %c0_i32_0 : i32, i32
  }
  func.func @transform_7(%arg0: i32) -> (i32, i32) {
    %c0_i32 = arith.constant 0 : i32
    %c0_i32_0 = arith.constant 0 : i32
    %c0_i32_1 = arith.constant 0 : i32
    return %c0_i32, %c0_i32_0 : i32, i32
  }
  func.func @transform_8(%arg0: i32) -> (i32, i32) {
    %c0_i32 = arith.constant 0 : i32
    %c0_i32_0 = arith.constant 0 : i32
    %c0_i32_1 = arith.constant 0 : i32
    return %c0_i32, %c0_i32_0 : i32, i32
  }
  func.func @transform_9(%arg0: i32) -> (i32, i32) {
    %c0_i32 = arith.constant 0 : i32
    %c0_i32_0 = arith.constant 0 : i32
    return %arg0, %c0_i32 : i32, i32
  }
}

</mosaic_0001>

<bundles_post_ra>
// kernel: _driving_mlp_forward_impl.1
= control target key start
LH: loop header
LB: loop body
LE: loop exit
PB: predicated region body
PF: predicated region fallthrough
CT: control target
= control target key end

     0   :  { %14 = vsyncpa [#allocation3], 0  ;;  %s761_s0 = inlined_call_operand.hbm [shape: f32[8,32], index: 0, kind: input, shape index: {}]   ;;  %s762_s1 = inlined_call_operand.hbm [shape: bf16[32,128], index: 1, kind: input, shape index: {}]   ;;  %s763_s2 = inlined_call_operand.vmem [shape: f32[1,128], index: 2, kind: input, shape index: {}]   ;;  %s764_s3 = inlined_call_operand.hbm [shape: bf16[128,128], index: 3, kind: input, shape index: {}]   ;;  %s765_s4 = inlined_call_operand.vmem [shape: f32[1,128], index: 4, kind: input, shape index: {}]   ;;  %s766_s5 = inlined_call_operand.hbm [shape: bf16[128,128], index: 5, kind: input, shape index: {}]   ;;  %s767_s6 = inlined_call_operand.vmem [shape: f32[1,128], index: 6, kind: input, shape index: {}]   ;;  %s768_s7 = inlined_call_operand.hbm [shape: bf16[128,128], index: 7, kind: input, shape index: {}]   ;;  %s769_s8 = inlined_call_operand.vmem [shape: f32[1,128], index: 8, kind: input, shape index: {}]   ;;  %s770_s9 = inlined_call_operand.vmem [shape: bf16[8,128], index: 9, kind: output, shape index: {}]  }
   0x1   :  { %15 = vsyncpa [#allocation5], 0  ;;  %s32_s11 = sshll.u32 %s762_s1, 4  ;;  %s33_s11 = int_to_ptr.hbm [resolvable:$true] %s32_s11 }
   0x2   :  { %16 = vsyncpa [#allocation8], 0  ;;  %s674_s12 = smov [#allocation4]   ;;  %s62_s16 = sshll.u32 %s766_s5, 4  ;;  %s63_s16 = int_to_ptr.hbm [resolvable:$true] %s62_s16 }
   0x3   :  { %s34_s13 = sshll.u32 %s674_s12, 4  ;;  %s675_s17 = smov 64   ;;  %s35_s13 = int_to_ptr.vmem [resolvable:$true] %s34_s13 }
   0x4   :  { %s676_s18 = smov 4   ;;  %s677_s19 = smov [#allocation7]  }
   0x5   :  { %40 = dma.hbm_to_vmem [thread:$0]  %s33_s11, 256, %s35_s13, [#allocation5], %s675_s17, %s675_s17, %s676_s18  }
   0x6   :  { %s64_s20 = sshll.u32 %s677_s19, 4  ;;  %s22_s23 = sshll.u32 %s761_s0, 4  ;;  %s65_s20 = int_to_ptr.vmem [resolvable:$true] %s64_s20  ;;  %s23_s23 = int_to_ptr.hbm [resolvable:$true] %s22_s23 }
   0x7   :  { %70 = dma.hbm_to_vmem [thread:$0]  %s63_s16, 1024, %s65_s20, [#allocation8], %s675_s17, %s675_s17, %s676_s18  }
   0x8   :  { %s47_s25 = sshll.u32 %s764_s3, 4  ;;  %s678_s26 = smov [#allocation2]   ;;  %s48_s25 = int_to_ptr.hbm [resolvable:$true] %s47_s25 }
   0x9   :  { %s24_s27 = sshll.u32 %s678_s26, 4  ;;  %s679_s5 = smov [#allocation6]   ;;  %s25_s27 = int_to_ptr.vmem [resolvable:$true] %s24_s27 }
   0xa   :  { %27 = dma.hbm_to_vmem [thread:$0]  %s23_s23, 128, %s25_s27, [#allocation3]  }
   0xb   :  { %s49_s28 = sshll.u32 %s679_s5, 4  ;;  %s77_s10 = sshll.u32 %s768_s7, 4  ;;  %s50_s28 = int_to_ptr.vmem [resolvable:$true] %s49_s28  ;;  %s78_s10 = int_to_ptr.hbm [resolvable:$true] %s77_s10 }
   0xc   :  { %55 = dma.hbm_to_vmem [thread:$0]  %s48_s25, 1024, %s50_s28, [#allocation5], %s675_s17, %s675_s17, %s676_s18  }
   0xd   :  { %s680_s0 = smov [#allocation9]  }
   0xe   :  { %s79_s11 = sshll.u32 %s680_s0, 4  ;;  %s80_s11 = int_to_ptr.vmem [resolvable:$true] %s79_s11 }
   0xf   :  { %85 = dma.hbm_to_vmem [thread:$0]  %s78_s10, 1024, %s80_s11, [#allocation8], %s675_s17, %s675_s17, %s676_s18  }
  0x10   :  { %668 = dma.done.wait [#allocation3], 128  }
  0x11   :  { %669 = vsyncadd [#allocation3], 4294967168 }
  0x12   :  { %670 = dma.done.wait [#allocation5], 1280  }
  0x13   :  { %671 = vsyncadd [#allocation5], 4294966016 }
  0x14   :  { %672 = dma.done.wait [#allocation8], 2048  }
  0x15   :  { %673 = vsyncadd [#allocation8], 4294965248  ;;  %v512_v0 = vld [vmem:[#allocation4 + $0x8] sm:$0xff]  ;;  %v511_v2 = vld [vmem:[#allocation4] sm:$0xff]  ;;  %vm131_vm0 = vcmask 261120  }
  0x16   :  { %v520_v1 = vld [vmem:[#allocation6 + $0x38] sm:$0xff]  ;;  %141 = vmatpush.bf16.msra.mxu0 %v512_v0  ;;  %v109_v3 = vld [vmem:[#allocation2] sm:$0xff]  ;;  %v519_v4 = vld [vmem:[#allocation6 + $0x30] sm:$0xff] }
  0x17   :  { %218 = vmatpush.bf16.msra.mxu1 %v520_v1  ;;  %v110_v5 = vpack.c.bf16 %v109_v3, %v109_v3  ;;  %v518_v6 = vld [vmem:[#allocation6 + $0x28] sm:$0xff]  ;;  %v517_v7 = vld [vmem:[#allocation6 + $0x20] sm:$0xff]  ;;  %v516_v8 = vld [vmem:[#allocation6 + $0x18] sm:$0xff] }
  0x18   :  { %v515_v9 = vld [vmem:[#allocation6 + $0x10] sm:$0xff]  ;;  %v514_v10 = vld [vmem:[#allocation6 + $0x8] sm:$0xff]  ;;  %v513_v11 = vld [vmem:[#allocation6] sm:$0xff] }
  0x19   :  { %v528_v12 = vld [vmem:[#allocation7 + $0x38] sm:$0xff]  ;;  %v527_v13 = vld [vmem:[#allocation7 + $0x30] sm:$0xff]  ;;  %v526_v14 = vld [vmem:[#allocation7 + $0x28] sm:$0xff] }
  0x1a   :  { %142 = vmatpush.bf16.msra.mxu0 %v511_v2  ;;  %301 = vmatpush.bf16.msra.mxu2 %v528_v12  ;;  %v525_v15 = vld [vmem:[#allocation7 + $0x20] sm:$0xff]  ;;  %v524_v16 = vld [vmem:[#allocation7 + $0x18] sm:$0xff]  ;;  %v523_v17 = vld [vmem:[#allocation7 + $0x10] sm:$0xff] }
  0x1b   :  { %219 = vmatpush.bf16.msra.mxu1 %v519_v4  ;;  %v544_v18 = vld [vmem:[%s763_s2] ss:$0 sm:$0xff]  ;;  %v521_v25 = vld [vmem:[#allocation7] sm:$0xff]  ;;  %v536_v26 = vld [vmem:[#allocation9 + $0x38] sm:$0xff] }
  0x1c   :  { %v522_v24 = vld [vmem:[#allocation7 + $0x8] sm:$0xff]  ;;  %384 = vmatpush.bf16.msra.mxu3 %v536_v26  ;;  %v535_v27 = vld [vmem:[#allocation9 + $0x30] sm:$0xff]  ;;  %v533_v29 = vld [vmem:[#allocation9 + $0x20] sm:$0xff] }
  0x1d   :  { %414 = vmatmul.msk.bf16.vlgmr.msra.gmra.mxu0 %vm131_vm0, %v110_v5  ;;  %v534_v28 = vld [vmem:[#allocation9 + $0x28] sm:$0xff]  ;;  %v532_v30 = vld [vmem:[#allocation9 + $0x18] sm:$0xff]  ;;  %v531_v31 = vld [vmem:[#allocation9 + $0x10] sm:$0xff] }
  0x1e   :  { %302 = vmatpush.bf16.msra.mxu2 %v527_v13  ;;  %v545_v32 = vld [vmem:[%s765_s4] ss:$0 sm:$0xff]  ;;  %v529_v39 = vld [vmem:[#allocation9] sm:$0xff] }
  0x1f   :  { %220 = vmatpush.bf16.msra.mxu1 %v518_v6  ;;  %v530_v38 = vld [vmem:[#allocation9 + $0x8] sm:$0xff] }
  0x20   :  { %385 = vmatpush.bf16.msra.mxu3 %v535_v27  ;;  %v546_v40 = vld [vmem:[%s767_s6] ss:$0 sm:$0xff] }
  0x21   :  { %v547_v46 = vld [vmem:[%s769_s8] ss:$0 sm:$0xff] }
  0x22   :  { %303 = vmatpush.bf16.msra.mxu2 %v526_v14 }
  0x23   :  { %221 = vmatpush.bf16.msra.mxu1 %v517_v7 }
  0x24   :  { %386 = vmatpush.bf16.msra.mxu3 %v534_v28 }
  0x26   :  { %304 = vmatpush.bf16.msra.mxu2 %v525_v15 }
  0x27   :  { %222 = vmatpush.bf16.msra.mxu1 %v516_v8 }
  0x28   :  { %387 = vmatpush.bf16.msra.mxu3 %v533_v29 }
  0x2a   :  { %305 = vmatpush.bf16.msra.mxu2 %v524_v16 }
  0x2b   :  { %223 = vmatpush.bf16.msra.mxu1 %v515_v9 }
  0x2c   :  { %388 = vmatpush.bf16.msra.mxu3 %v532_v30 }
  0x2e   :  { %306 = vmatpush.bf16.msra.mxu2 %v523_v17 }
  0x2f   :  { %224 = vmatpush.bf16.msra.mxu1 %v514_v10 }
  0x30   :  { %389 = vmatpush.bf16.msra.mxu3 %v531_v31 }
  0x32   :  { %307 = vmatpush.bf16.msra.mxu2 %v522_v24 }
  0x33   :  { %225 = vmatpush.bf16.msra.mxu1 %v513_v11 }
  0x34   :  { %390 = vmatpush.bf16.msra.mxu3 %v530_v38 }
  0x36   :  { %308 = vmatpush.bf16.msra.mxu2 %v521_v25 }
  0x38   :  { %391 = vmatpush.bf16.msra.mxu3 %v529_v39 }
  0x9a   :  { %v144_v19 = vpop.f32.mrf.mxu0 }
  0x9b   :  { %v145_v20 = vadd.f32 %v544_v18, %v144_v19 }
  0x9d   :  { %v148_v21 = vmax.f32 %v145_v20, 0.0 }
  0x9f   :  { %v149_v22 = vpack.c.bf16 %v148_v21, %v148_v21 }
  0xa1   :  { %226 = vmatmul.bf16.vlgmr.msra.gmra.mxu1 %v149_v22 }
  0xa2   :  { %v146_v23 = vpop.f32.mrf.mxu0 }
 0x11e   :  { %v227_v33 = vpop.f32.mrf.mxu1 }
 0x11f   :  { %v228_v34 = vadd.f32 %v545_v32, %v227_v33 }
 0x121   :  { %v231_v35 = vmax.f32 %v228_v34, 0.0 }
 0x123   :  { %v232_v36 = vpack.c.bf16 %v231_v35, %v231_v35 }
 0x125   :  { %309 = vmatmul.bf16.vlgmr.msra.gmra.mxu2 %v232_v36 }
 0x126   :  { %v229_v37 = vpop.f32.mrf.mxu1 }
 0x1a8   :  { %v310_v41 = vpop.f32.mrf.mxu2 }
 0x1a9   :  { %v311_v42 = vadd.f32 %v546_v40, %v310_v41 }
 0x1ab   :  { %v314_v43 = vmax.f32 %v311_v42, 0.0 }
 0x1ad   :  { %v315_v44 = vpack.c.bf16 %v314_v43, %v314_v43 }
 0x1af   :  { %392 = vmatmul.bf16.vlgmr.msra.gmra.mxu3 %v315_v44 }
 0x1b0   :  { %v312_v45 = vpop.f32.mrf.mxu2 }
 0x232   :  { %v393_v47 = vpop.f32.mrf.mxu3 }
 0x233   :  { %v394_v48 = vadd.f32 %v547_v46, %v393_v47 }
 0x235   :  { %v397_v49 = vpack.c.bf16 %v394_v48, %v394_v48 }
 0x237   :  { %398 = vst [vmem:[%s770_s9] sm:$0xf] %v397_v49 }
 0x23a   :  { %v395_v50 = vpop.f32.mrf.mxu3 }
 0x23b   :  { %403 = vsyncpa [#allocation3], 1 }
 0x23c   :  { %404 = vsyncpa [#allocation5], 1 }
 0x23d   :  { %405 = vsyncpa [#allocation8], 1 }

</bundles_post_ra>
